<compile_context>
chip_gen: v5e
topology: v5e:2x2
jax: 0.10.0
libtpu: 0.0.40
codegen_flags: <defaults>
</compile_context>

<pallas_src>
import functools

import jax
import jax.numpy as jnp
from jax.experimental import pallas as pl
from jax.experimental.pallas import tpu as pltpu


def _round_up(x, m):
    return ((x + m - 1) // m) * m


def _choose_tiling(batch, max_block):
    """Pick (block_batch, padded_batch). Lane axis => multiples of 128."""
    b128 = _round_up(max(batch, 1), 128)
    if b128 <= 128:
        return b128, b128                       # single tiny block, no 4x padding
    # >= 2 grid steps so v7x dual-TC can split; cap block for very large batches
    tb = min(max_block, _round_up((b128 + 1) // 2, 128))
    b_pad = _round_up(b128, tb)
    return tb, b_pad


# ----------------------------------------------------------------------------
# Pallas kernel: fused block-diagonal Q1+Q2 MLP, feature-major (batch on lanes).
# ----------------------------------------------------------------------------
def _make_kernel(n_hidden, compute_dtype):
    def kernel_hidden(x_ref, wf_ref, wr_ref, out_ref):
        # x_ref:  (d_in+1, TB)   carry-ones row already appended host-side
        # wf_ref: (2*size+1, d_in+1)      layer-0 aug weight (transposed)
        # wr_ref: (n_hidden, 2*size+1, 2*size+1)  hidden + final aug weights (transposed)
        h = jnp.dot(wf_ref[...], x_ref[...], preferred_element_type=jnp.float32)
        h = jnp.maximum(h, 0.0).astype(compute_dtype)
        for l in range(n_hidden - 1):
            h = jnp.dot(wr_ref[l], h, preferred_element_type=jnp.float32)
            h = jnp.maximum(h, 0.0).astype(compute_dtype)
        q = jnp.dot(wr_ref[n_hidden - 1], h, preferred_element_type=jnp.float32)
        out_ref[...] = q[:2, :].astype(out_ref.dtype)        # (2, TB), lane-dense

    def kernel_linear(x_ref, wf_ref, out_ref):               # n_layers == 0 case
        q = jnp.dot(wf_ref[...], x_ref[...], preferred_element_type=jnp.float32)
        out_ref[...] = q[:2, :].astype(out_ref.dtype)

    return kernel_hidden if n_hidden >= 1 else kernel_linear


@functools.partial(jax.jit,
                   static_argnames=("n_layers", "max_block", "compute_dtype"))
def _run_q_nets(x_t, w_first_t, w_rest_t, *, n_layers, max_block, compute_dtype):
    d_aug, batch = x_t.shape
    tb, b_pad = _choose_tiling(batch, max_block)
    if b_pad != batch:
        x_t = jnp.pad(x_t, ((0, 0), (0, b_pad - batch)))
    grid = (b_pad // tb,)

    in_specs = [pl.BlockSpec((d_aug, tb), lambda i: (0, i)),
                pl.BlockSpec(w_first_t.shape, lambda i: (0, 0))]
    args = [x_t, w_first_t]
    if n_layers >= 1:
        in_specs.append(pl.BlockSpec(w_rest_t.shape, lambda i: (0, 0, 0)))
        args.append(w_rest_t)

    out_specs = pl.BlockSpec((2, tb), lambda i: (0, i))       # batch on 128-lane axis
    out_shape = jax.ShapeDtypeStruct((2, b_pad), jnp.float32)

    return pl.pallas_call(
        _make_kernel(n_layers, compute_dtype),
        grid=grid,
        in_specs=in_specs,
        out_specs=out_specs,
        out_shape=out_shape,
        compiler_params=pltpu.CompilerParams(
            dimension_semantics=("parallel",),      # megacore / v7x dual-TC
            vmem_limit_bytes=32 * 1024 * 1024,      # tiny footprint, safe everywhere
        ),
    )(*args)


# ----------------------------------------------------------------------------
# Module-equivalent wrapper
# ----------------------------------------------------------------------------
class PeerSACCriticV2Pallas:
    def __init__(self, hparams, key, *, max_block=4096, compute_dtype=jnp.float32):
        self.ob_dim = hparams["ob_dim"]
        self.ac_dim = hparams["ac_dim"]
        self.size = hparams["size"]
        self.n_layers = hparams["n_layers"]
        self.advice_dim = hparams["advice_dim"]
        self._max_block = max_block
        # compute_dtype=jnp.bfloat16 recommended on v5e (params stored bf16 in HBM,
        # f32 accumulation kept); relax the demo tolerance if enabled.
        self._compute_dtype = compute_dtype

        in_dim = self.ob_dim + self.ac_dim + self.advice_dim
        out_dim = 1 + self.advice_dim

        def init_mlp(k):
            params = []
            dims = [in_dim] + [self.size] * self.n_layers + [out_dim]
            for d_in, d_out in zip(dims[:-1], dims[1:]):
                k, kw, kb = jax.random.split(k, 3)
                bound = 1.0 / jnp.sqrt(d_in)   # torch.nn.Linear default init range
                w = jax.random.uniform(kw, (d_in, d_out), jnp.float32, -bound, bound)
                b = jax.random.uniform(kb, (1, d_out), jnp.float32, -bound, bound)
                params += [w, b]
            return params

        k1, k2 = jax.random.split(key)
        self.q1_params = init_mlp(k1)
        self.q2_params = init_mlp(k2)
        self._w_first_t, self._w_rest_t = self._pack_eval_params()

    def _pack_eval_params(self):
        """Fuse Q1/Q2 into block-diagonal weights, fold biases via a carry-ones
        row, drop dead advice rows/cols, store transposed (feature-major)."""
        in_used = self.ob_dim + self.ac_dim
        H2 = 2 * self.size
        nl = self.n_layers
        q1, q2 = self.q1_params, self.q2_params
        cd = self._compute_dtype

        def blockdiag(a, b):
            za = jnp.zeros_like(b)[: a.shape[0]] if False else None  # unused helper guard
            r1, c1 = a.shape
            r2, c2 = b.shape
            top = jnp.concatenate([a, jnp.zeros((r1, c2), jnp.float32)], axis=1)
            bot = jnp.concatenate([jnp.zeros((r2, c1), jnp.float32), b], axis=1)
            return jnp.concatenate([top, bot], axis=0)

        if nl == 0:
            # Single Linear: keep only the q column of each net.
            w_cat = jnp.concatenate([q1[0][:in_used, 0:1], q2[0][:in_used, 0:1]], axis=1)
            b_cat = jnp.concatenate([q1[1][:, 0:1], q2[1][:, 0:1]], axis=1)
            w_aug = jnp.concatenate([w_cat, b_cat], axis=0)           # (in_used+1, 2)
            return jnp.asarray(w_aug.T, cd), None                     # (2, in_used+1)

        # Layer 0: shared input -> concat along output dim (advice inputs dropped).
        w0 = jnp.concatenate([q1[0][:in_used], q2[0][:in_used]], axis=1)   # (in_used, H2)
        b0 = jnp.concatenate([q1[1], q2[1]], axis=1)                       # (1, H2)
        w0_aug = jnp.concatenate(
            [jnp.concatenate([w0, jnp.zeros((in_used, 1), jnp.float32)], axis=1),
             jnp.concatenate([b0, jnp.ones((1, 1), jnp.float32)], axis=1)], axis=0)
        w_first_t = w0_aug.T                                                # (H2+1, in_used+1)

        rest = []
        # Hidden layers 1..nl-1: block-diagonal, carry column preserved.
        for l in range(1, nl):
            w_bd = blockdiag(q1[2 * l], q2[2 * l])                          # (H2, H2)
            b_cat = jnp.concatenate([q1[2 * l + 1], q2[2 * l + 1]], axis=1)  # (1, H2)
            w_aug = jnp.concatenate(
                [jnp.concatenate([w_bd, jnp.zeros((H2, 1), jnp.float32)], axis=1),
                 jnp.concatenate([b_cat, jnp.ones((1, 1), jnp.float32)], axis=1)], axis=0)
            rest.append(w_aug.T)                                            # (H2+1, H2+1)

        # Final layer: keep only the q column of each net, pad to slab width.
        wf_bd = blockdiag(q1[2 * nl][:, 0:1], q2[2 * nl][:, 0:1])           # (H2, 2)
        bf_cat = jnp.concatenate([q1[2 * nl + 1][:, 0:1],
                                  q2[2 * nl + 1][:, 0:1]], axis=1)          # (1, 2)
        wf_aug = jnp.concatenate([wf_bd, bf_cat], axis=0)                   # (H2+1, 2)
        wf_t = jnp.concatenate(
            [wf_aug.T, jnp.zeros((H2 - 1, H2 + 1), jnp.float32)], axis=0)   # (H2+1, H2+1)
        rest.append(wf_t)

        w_rest_t = jnp.stack(rest)                                          # (nl, H2+1, H2+1)
        return jnp.asarray(w_first_t, cd), jnp.asarray(w_rest_t, cd)

    def forward(self, obs, action, train_mode=False):
        # TODO(synk): train-mode peer-advice sampling (np.random + recursive calls into
        # other critics) is host-side control flow; only the eval / zero-advice path is
        # implemented (advice == 0 contributes nothing, so it is elided).
        obs = jnp.asarray(obs, jnp.float32)
        action = jnp.asarray(action, jnp.float32)
        batch = obs.shape[0]
        # Append the carry-ones column (bias folding), go feature-major (batch on lanes).
        x = jnp.concatenate([obs, action, jnp.ones((batch, 1), jnp.float32)], axis=-1)
        x_t = x.T.astype(self._compute_dtype)                   # (d_in+1, batch)
        q = _run_q_nets(x_t, self._w_first_t, self._w_rest_t,
                        n_layers=self.n_layers,
                        max_block=self._max_block,
                        compute_dtype=self._compute_dtype)      # (2, b_pad)
        q1 = q[0, :batch].reshape(batch, 1)
        q2 = q[1, :batch].reshape(batch, 1)
        return [q1, q2]


if __name__ == "__main__":
    hparams = dict(
        ob_dim=8,
        ac_dim=4,
        discrete=False,
        size=32,
        n_layers=2,
        learning_rate=3e-4,
        self_advice=False,
        epsilon=0.1,
        advice_dim=4,
        gamma=0.99,
    )

    key = jax.random.PRNGKey(0)
    k_params, k_obs, k_act = jax.random.split(key, 3)

    critic = PeerSACCriticV2Pallas(hparams, k_params)

    batch = 64
    obs = jax.random.normal(k_obs, (batch, hparams["ob_dim"]), jnp.float32)
    action = jax.random.normal(k_act, (batch, hparams["ac_dim"]), jnp.float32)

    q1, q2 = critic.forward(obs, action)
    jax.block_until_ready((q1, q2))

    # Pure-JAX reference: original module math (explicit zero advice, full params).
    def ref_mlp(x, params, n_layers):
        h = x
        for l in range(n_layers):
            h = jnp.maximum(h @ params[2 * l] + params[2 * l + 1], 0.0)
        return h @ params[2 * n_layers] + params[2 * n_layers + 1]

    x_ref = jnp.concatenate(
        [obs, action, jnp.zeros((batch, hparams["advice_dim"]), jnp.float32)], axis=-1
    )
    q1_ref = ref_mlp(x_ref, critic.q1_params, hparams["n_layers"])[:, :1]
    q2_ref = ref_mlp(x_ref, critic.q2_params, hparams["n_layers"])[:, :1]

    assert q1.shape == (batch, 1) and q2.shape == (batch, 1)
    assert jnp.allclose(q1, q1_ref, atol=2e-4, rtol=2e-4), "q1 mismatch"
    assert jnp.allclose(q2, q2_ref, atol=2e-4, rtol=2e-4), "q2 mismatch"

    print("KERNEL_OK")
</pallas_src>

<mosaic_0001>
module attributes {stable_mosaic.version = 11 : i64} {
  func.func @kernel_hidden(%arg0: i32, %arg1: memref<13x128xf32, #tpu.memory_space<vmem>>, %arg2: memref<65x13xf32, #tpu.memory_space<vmem>>, %arg3: memref<2x65x65xf32, #tpu.memory_space<vmem>>, %arg4: memref<2x128xf32, #tpu.memory_space<vmem>>) attributes {dimension_semantics = [#tpu.dimension_semantics<parallel>], iteration_bounds = array<i64: 1>, scalar_prefetch = 0 : i64, scratch_operands = 0 : i64, tpu.core_type = #tpu.core_type<tc>, window_params = [{transform_indices = @transform_0, window_bounds = array<i64: 13, 128>}, {pipeline_mode = #tpu.pipeline_mode<synchronous>, transform_indices = @transform_1, window_bounds = array<i64: 65, 13>}, {pipeline_mode = #tpu.pipeline_mode<synchronous>, transform_indices = @transform_2, window_bounds = array<i64: 2, 65, 65>}, {transform_indices = @transform_3, window_bounds = array<i64: 2, 128>}]} {
    %c0 = arith.constant 0 : index
    %c0_0 = arith.constant 0 : index
    %0 = vector.load %arg2[%c0, %c0_0] : memref<65x13xf32, #tpu.memory_space<vmem>>, vector<65x13xf32>
    %c0_1 = arith.constant 0 : index
    %c0_2 = arith.constant 0 : index
    %1 = vector.load %arg1[%c0_1, %c0_2] : memref<13x128xf32, #tpu.memory_space<vmem>>, vector<13x128xf32>
    %cst = arith.constant dense<0.000000e+00> : vector<65x128xf32>
    %2 = tpu.matmul %0, %1, %cst {dimension_numbers = #tpu.dot_dimension_numbers<[1], [0], [0], [1], [0, 0, 1, 1], [], []>} : vector<65x13xf32>, vector<13x128xf32>, vector<65x128xf32> -> vector<65x128xf32>
    %cst_3 = arith.constant 0.000000e+00 : f32
    %3 = vector.broadcast %cst_3 : f32 to vector<65x128xf32>
    %4 = arith.maximumf %2, %3 : vector<65x128xf32>
    %c0_4 = arith.constant 0 : index
    %c0_5 = arith.constant 0 : index
    %c0_6 = arith.constant 0 : index
    %5 = vector.load %arg3[%c0_4, %c0_5, %c0_6] : memref<2x65x65xf32, #tpu.memory_space<vmem>>, vector<1x65x65xf32>
    %6 = vector.shape_cast %5 : vector<1x65x65xf32> to vector<65x65xf32>
    %cst_7 = arith.constant dense<0.000000e+00> : vector<65x128xf32>
    %7 = tpu.matmul %6, %4, %cst_7 {dimension_numbers = #tpu.dot_dimension_numbers<[1], [0], [0], [1], [0, 0, 1, 1], [], []>} : vector<65x65xf32>, vector<65x128xf32>, vector<65x128xf32> -> vector<65x128xf32>
    %cst_8 = arith.constant 0.000000e+00 : f32
    %8 = vector.broadcast %cst_8 : f32 to vector<65x128xf32>
    %9 = arith.maximumf %7, %8 : vector<65x128xf32>
    %c1 = arith.constant 1 : index
    %c0_9 = arith.constant 0 : index
    %c0_10 = arith.constant 0 : index
    %10 = vector.load %arg3[%c1, %c0_9, %c0_10] : memref<2x65x65xf32, #tpu.memory_space<vmem>>, vector<1x65x65xf32>
    %11 = vector.shape_cast %10 : vector<1x65x65xf32> to vector<65x65xf32>
    %cst_11 = arith.constant dense<0.000000e+00> : vector<65x128xf32>
    %12 = tpu.matmul %11, %9, %cst_11 {dimension_numbers = #tpu.dot_dimension_numbers<[1], [0], [0], [1], [0, 0, 1, 1], [], []>} : vector<65x65xf32>, vector<65x128xf32>, vector<65x128xf32> -> vector<65x128xf32>
    %13 = vector.extract_strided_slice %12 {offsets = [0, 0], sizes = [2, 128], strides = [1, 1]} : vector<65x128xf32> to vector<2x128xf32>
    %c0_12 = arith.constant 0 : index
    %c0_13 = arith.constant 0 : index
    %14 = vector.load %arg4[%c0_12, %c0_13] : memref<2x128xf32, #tpu.memory_space<vmem>>, vector<2x128xf32>
    tpu.vector_store %arg4[%c0_12, %c0_13], %13 {strides = array<i32>} : memref<2x128xf32, #tpu.memory_space<vmem>>, vector<2x128xf32>,
    return
  }
  func.func @transform_0(%arg0: i32) -> (i32, i32) {
    %c0_i32 = arith.constant 0 : i32
    %c0_i32_0 = arith.constant 0 : i32
    return %c0_i32, %arg0 : i32, i32
  }
  func.func @transform_1(%arg0: i32) -> (i32, i32) {
    %c0_i32 = arith.constant 0 : i32
    %c0_i32_0 = arith.constant 0 : i32
    %c0_i32_1 = arith.constant 0 : i32
    return %c0_i32, %c0_i32_0 : i32, i32
  }
  func.func @transform_2(%arg0: i32) -> (i32, i32, i32) {
    %c0_i32 = arith.constant 0 : i32
    %c0_i32_0 = arith.constant 0 : i32
    %c0_i32_1 = arith.constant 0 : i32
    %c0_i32_2 = arith.constant 0 : i32
    return %c0_i32, %c0_i32_0, %c0_i32_1 : i32, i32, i32
  }
  func.func @transform_3(%arg0: i32) -> (i32, i32) {
    %c0_i32 = arith.constant 0 : i32
    %c0_i32_0 = arith.constant 0 : i32
    return %c0_i32, %arg0 : i32, i32
  }
}

</mosaic_0001>

<bundles_post_ra>
// kernel: _run_q_nets.1
= control target key start
LH: loop header
LB: loop body
LE: loop exit
PB: predicated region body
PF: predicated region fallthrough
CT: control target
= control target key end

     0   :  { %vm54_vm0 = vcmask 1044480   ;;  %vm26_vm1 = vcmask 105472   ;;  %s524_s0 = inlined_call_operand.vmem [shape: f32[13,128], index: 0, kind: input, shape index: {}]   ;;  %s525_s1 = inlined_call_operand.vmem [shape: f32[65,13], index: 1, kind: input, shape index: {}]   ;;  %s526_s2 = inlined_call_operand.vmem [shape: f32[2,65,65], index: 2, kind: input, shape index: {}]   ;;  %s527_s3 = inlined_call_operand.hbm [shape: f32[2,128], index: 3, kind: output, shape index: {}]  }
   0x1   :  { %v25_v0 = vld [vmem:[%s524_s0 + $0x8] sm:$0x1f]  ;;  %v24_v1 = vld [vmem:[%s524_s0] sm:$0xff] }
   0x2   :  { %298 = vmatpush.msk.msra.mxu0 %vm54_vm0, %v25_v0  ;;  %v15_v2 = vld [vmem:[%s525_s1] sm:$0xff] }
   0x3   :  { %8 = vsyncpa [#allocation3], 0  ;;  %v16_v3 = vld [vmem:[%s525_s1 + $0x8] sm:$0xff]  ;;  %v17_v4 = vld [vmem:[%s525_s1 + $0x10] sm:$0xff]  ;;  %vm148_vm2 = vcmask 1040384   ;;  %vm120_vm3 = vcmask 531456  }
   0x4   :  { %73 = vmatpush.msra.mxu0 %v24_v1  ;;  %v18_v5 = vld [vmem:[%s525_s1 + $0x18] sm:$0xff]  ;;  %v19_v6 = vld [vmem:[%s525_s1 + $0x20] sm:$0xff]  ;;  %v20_v7 = vld [vmem:[%s525_s1 + $0x28] sm:$0xff]  ;;  %s382_s12 = smov [#allocation2]   ;;  %s289_s16 = sshll.u32 %s527_s3, 4  ;;  %s290_s16 = int_to_ptr.hbm [resolvable:$true] %s289_s16 }
   0x5   :  { %299 = vmatmul.msk.f32.vlgmr.msra.gmra.mxu0 %vm26_vm1, %v15_v2  ;;  %v21_v8 = vld [vmem:[%s525_s1 + $0x30] sm:$0xff]  ;;  %v22_v9 = vld [vmem:[%s525_s1 + $0x38] sm:$0xff]  ;;  %v23_v10 = vld [vmem:[%s525_s1 + $0x40] sm:$0x1]  ;;  %s287_s13 = sshll.u32 %s382_s12, 4  ;;  %s288_s13 = int_to_ptr.vmem [resolvable:$true] %s287_s13 }
   0x6   :  { %v111_v29 = vld [vmem:[%s526_s2] sm:$0xff]  ;;  %v118_v30 = vld [vmem:[%s526_s2 + $0x38] sm:$0xff]  ;;  %v112_v31 = vld [vmem:[%s526_s2 + $0x8] sm:$0xff] }
   0x7   :  { %v119_v32 = vld [vmem:[%s526_s2 + $0x40] sm:$0x1]  ;;  %v113_v33 = vld [vmem:[%s526_s2 + $0x10] sm:$0xff]  ;;  %v114_v34 = vld [vmem:[%s526_s2 + $0x18] sm:$0xff] }
   0x8   :  { %v115_v35 = vld [vmem:[%s526_s2 + $0x20] sm:$0xff]  ;;  %v116_v36 = vld [vmem:[%s526_s2 + $0x28] sm:$0xff]  ;;  %v117_v37 = vld [vmem:[%s526_s2 + $0x30] sm:$0xff] }
   0x9   :  { %v318_v56 = vld [vmem:[%s526_s2 + $0x48] sm:$0xff]  ;;  %v319_v57 = vld [vmem:[%s526_s2 + $0x50] sm:$0xff]  ;;  %v325_v58 = vld [vmem:[%s526_s2 + $0x80] sm:$0xff] }
   0xa   :  { %v320_v59 = vld [vmem:[%s526_s2 + $0x58] sm:$0xff]  ;;  %v326_v60 = vld [vmem:[%s526_s2 + $0x88] sm:$0x1]  ;;  %v321_v61 = vld [vmem:[%s526_s2 + $0x60] sm:$0xff] }
   0xb   :  { %v322_v62 = vld [vmem:[%s526_s2 + $0x68] sm:$0xff]  ;;  %v323_v63 = vld [vmem:[%s526_s2 + $0x70] sm:$0xff]  ;;  %v324_v0 = vld [vmem:[%s526_s2 + $0x78] sm:$0xff] }
   0xd   :  { %300 = vmatmul.msk.f32.gmra.mxu0 %vm26_vm1, %v16_v3 }
  0x15   :  { %301 = vmatmul.msk.f32.gmra.mxu0 %vm26_vm1, %v17_v4 }
  0x1d   :  { %302 = vmatmul.msk.f32.gmra.mxu0 %vm26_vm1, %v18_v5 }
  0x25   :  { %303 = vmatmul.msk.f32.gmra.mxu0 %vm26_vm1, %v19_v6 }
  0x2d   :  { %304 = vmatmul.msk.f32.gmra.mxu0 %vm26_vm1, %v20_v7 }
  0x35   :  { %305 = vmatmul.msk.f32.gmra.mxu0 %vm26_vm1, %v21_v8 }
  0x3d   :  { %306 = vmatmul.msk.f32.gmra.mxu0 %vm26_vm1, %v22_v9 }
  0x45   :  { %307 = vmatmul.msk.f32.gmra.mxu0 %vm26_vm1, %v23_v10 }
  0x82   :  { %v75_v11 = vpop.f32.mrf.mxu0 }
  0x83   :  { %v102_v28 = vmax.f32 %v75_v11, 0.0 }
  0x8a   :  { %v78_v12 = vpop.f32.mrf.mxu0 }
  0x8b   :  { %v103_v27 = vmax.f32 %v78_v12, 0.0 }
  0x92   :  { %v81_v13 = vpop.f32.mrf.mxu0 }
  0x93   :  { %v104_v26 = vmax.f32 %v81_v13, 0.0 }
  0x9a   :  { %v84_v14 = vpop.f32.mrf.mxu0 }
  0x9b   :  { %v105_v25 = vmax.f32 %v84_v14, 0.0 }
  0xa2   :  { %v87_v15 = vpop.f32.mrf.mxu0 }
  0xa3   :  { %v106_v24 = vmax.f32 %v87_v15, 0.0 }
  0xaa   :  { %v90_v16 = vpop.f32.mrf.mxu0 }
  0xab   :  { %v107_v23 = vmax.f32 %v90_v16, 0.0 }
  0xb2   :  { %v93_v17 = vpop.f32.mrf.mxu0 }
  0xb3   :  { %v108_v22 = vmax.f32 %v93_v17, 0.0 }
  0xba   :  { %v96_v18 = vpop.f32.mrf.mxu0 }
  0xbb   :  { %v109_v21 = vmax.f32 %v96_v18, 0.0 }
  0xc2   :  { %v99_v19 = vpop.f32.mrf.mxu0 }
  0xc3   :  { %v110_v20 = vmax.f32 %v99_v19, 0.0 }
  0xc5   :  { %308 = vmatpush.msk.msra.mxu1 %vm148_vm2, %v110_v20  ;;  %337 = vmatpush.msk.msra.mxu3 %vm148_vm2, %v110_v20 }
  0xc7   :  { %160 = vmatpush.msra.mxu1 %v109_v21  ;;  %338 = vmatpush.msra.mxu3 %v109_v21 }
  0xc9   :  { %161 = vmatpush.msra.mxu1 %v108_v22  ;;  %339 = vmatpush.msra.mxu3 %v108_v22 }
  0xcb   :  { %162 = vmatpush.msra.mxu1 %v107_v23  ;;  %340 = vmatpush.msra.mxu3 %v107_v23 }
  0xcd   :  { %163 = vmatpush.msra.mxu1 %v106_v24  ;;  %341 = vmatpush.msra.mxu3 %v106_v24 }
  0xcf   :  { %164 = vmatpush.msra.mxu1 %v105_v25  ;;  %342 = vmatpush.msra.mxu3 %v105_v25 }
  0xd1   :  { %165 = vmatpush.msra.mxu1 %v104_v26  ;;  %343 = vmatpush.msra.mxu3 %v104_v26 }
  0xd3   :  { %166 = vmatpush.msra.mxu1 %v103_v27  ;;  %344 = vmatpush.msra.mxu3 %v103_v27 }
  0xd5   :  { %167 = vmatpush.msra.mxu1 %v102_v28  ;;  %345 = vmatpush.msra.mxu3 %v102_v28 }
  0xd6   :  { %309 = vmatmul.msk.f32.vlgmr.msra.gmra.mxu1 %vm120_vm3, %v111_v29  ;;  %316 = vmatmul.msk.f32.vlgmr.msra.gmra.mxu3 %vm120_vm3, %v118_v30 }
  0xde   :  { %310 = vmatmul.msk.f32.gmra.mxu1 %vm120_vm3, %v112_v31  ;;  %317 = vmatmul.msk.f32.gmra.mxu3 %vm120_vm3, %v119_v32 }
  0xe6   :  { %311 = vmatmul.msk.f32.gmra.mxu1 %vm120_vm3, %v113_v33 }
  0xee   :  { %312 = vmatmul.msk.f32.gmra.mxu1 %vm120_vm3, %v114_v34 }
  0xf6   :  { %313 = vmatmul.msk.f32.gmra.mxu1 %vm120_vm3, %v115_v35 }
  0xfe   :  { %314 = vmatmul.msk.f32.gmra.mxu1 %vm120_vm3, %v116_v36 }
 0x106   :  { %315 = vmatmul.msk.f32.gmra.mxu1 %vm120_vm3, %v117_v37 }
 0x153   :  { %v169_v38 = vpop.f32.mrf.mxu1 }
 0x154   :  { %v196_v55 = vmax.f32 %v169_v38, 0.0 }
 0x159   :  { %v190_v39 = vpop.f32.mrf.mxu3 }
 0x15a   :  { %v203_v42 = vmax.f32 %v190_v39, 0.0 }
 0x15b   :  { %v172_v40 = vpop.f32.mrf.mxu1 }
 0x15c   :  { %v197_v54 = vmax.f32 %v172_v40, 0.0 }
 0x161   :  { %v193_v41 = vpop.f32.mrf.mxu3 }
 0x162   :  { %v204_v43 = vmax.f32 %v193_v41, 0.0 }
 0x163   :  { %v175_v44 = vpop.f32.mrf.mxu1 }
 0x164   :  { %327 = vmatpush.msk.msra.mxu2 %vm148_vm2, %v204_v43  ;;  %346 = vmatpush.msk.msrb.mxu3 %vm148_vm2, %v204_v43  ;;  %v198_v53 = vmax.f32 %v175_v44, 0.0 }
 0x166   :  { %253 = vmatpush.msra.mxu2 %v203_v42  ;;  %347 = vmatpush.msrb.mxu3 %v203_v42 }
 0x16b   :  { %v178_v45 = vpop.f32.mrf.mxu1 }
 0x16c   :  { %v199_v52 = vmax.f32 %v178_v45, 0.0 }
 0x173   :  { %v181_v46 = vpop.f32.mrf.mxu1 }
 0x174   :  { %v200_v51 = vmax.f32 %v181_v46, 0.0 }
 0x17b   :  { %v184_v47 = vpop.f32.mrf.mxu1 }
 0x17c   :  { %v201_v50 = vmax.f32 %v184_v47, 0.0 }
 0x183   :  { %v187_v48 = vpop.f32.mrf.mxu1 }
 0x184   :  { %v202_v49 = vmax.f32 %v187_v48, 0.0 }
 0x186   :  { %254 = vmatpush.msra.mxu2 %v202_v49  ;;  %348 = vmatpush.msrb.mxu3 %v202_v49 }
 0x188   :  { %255 = vmatpush.msra.mxu2 %v201_v50  ;;  %349 = vmatpush.msrb.mxu3 %v201_v50 }
 0x18a   :  { %256 = vmatpush.msra.mxu2 %v200_v51  ;;  %350 = vmatpush.msrb.mxu3 %v200_v51 }
 0x18c   :  { %257 = vmatpush.msra.mxu2 %v199_v52  ;;  %351 = vmatpush.msrb.mxu3 %v199_v52 }
 0x18e   :  { %258 = vmatpush.msra.mxu2 %v198_v53  ;;  %352 = vmatpush.msrb.mxu3 %v198_v53 }
 0x190   :  { %259 = vmatpush.msra.mxu2 %v197_v54  ;;  %353 = vmatpush.msrb.mxu3 %v197_v54 }
 0x192   :  { %260 = vmatpush.msra.mxu2 %v196_v55  ;;  %354 = vmatpush.msrb.mxu3 %v196_v55 }
 0x193   :  { %328 = vmatmul.msk.f32.vlgmr.msra.gmra.mxu2 %vm120_vm3, %v318_v56  ;;  %335 = vmatmul.msk.f32.vlgmr.msrb.gmra.mxu3 %vm120_vm3, %v325_v58 }
 0x19b   :  { %329 = vmatmul.msk.f32.gmra.mxu2 %vm120_vm3, %v319_v57  ;;  %336 = vmatmul.msk.f32.gmra.mxu3 %vm120_vm3, %v326_v60 }
 0x1a3   :  { %330 = vmatmul.msk.f32.gmra.mxu2 %vm120_vm3, %v320_v59 }
 0x1ab   :  { %331 = vmatmul.msk.f32.gmra.mxu2 %vm120_vm3, %v321_v61 }
 0x1b3   :  { %332 = vmatmul.msk.f32.gmra.mxu2 %vm120_vm3, %v322_v62 }
 0x1bb   :  { %333 = vmatmul.msk.f32.gmra.mxu2 %vm120_vm3, %v323_v63 }
 0x1c3   :  { %334 = vmatmul.msk.f32.gmra.mxu2 %vm120_vm3, %v324_v0 }
 0x216   :  { %v262_v1 = vpop.f32.mrf.mxu2  ;;  %v277_v3 = vpop.f32.mrf.mxu3 }
 0x217   :  { %281 = vst [vmem:[#allocation2] sm:$0x3] %v262_v1 }
 0x218   :  { %292 = dma.vmem_to_hbm [thread:$0]  %s288_s13, 32, %s290_s16, [#allocation3]  }
 0x21e   :  { %v265_v2 = vpop.f32.mrf.mxu2  ;;  %v279_v5 = vpop.f32.mrf.mxu3 }
 0x226   :  { %v267_v4 = vpop.f32.mrf.mxu2 }
 0x22e   :  { %v269_v6 = vpop.f32.mrf.mxu2 }
 0x236   :  { %v271_v7 = vpop.f32.mrf.mxu2 }
 0x23e   :  { %v273_v8 = vpop.f32.mrf.mxu2 }
 0x246   :  { %v275_v9 = vpop.f32.mrf.mxu2 }
 0x247   :  { %380 = dma.done.wait [#allocation3], 32  }
 0x248   :  { %381 = vsyncadd [#allocation3], 4294967264 }
 0x249   :  { %297 = vsyncpa [#allocation3], 1 }

</bundles_post_ra>
